<compile_context>
chip_gen: v5e
topology: v5e:2x2
jax: 0.10.0
libtpu: 0.0.40
codegen_flags: <defaults>
</compile_context>

<pallas_src>
import jax
import jax.numpy as jnp
from jax.experimental import pallas as pl
from jax.experimental.pallas import tpu as pltpu


def _scale_rows_kernel(x_ref, w_ref, o_ref):
    # x_ref: (TILE_ROWS, COLS) lane-dense data tile
    # w_ref: (TILE_ROWS, 1) per-row folded scale (conv1 * conv2 * conv3)
    o_ref[...] = (x_ref[...] * w_ref[...]).astype(o_ref.dtype)


def _pick_tile_rows(rows, cols, itemsize, target_bytes=2 * 1024 * 1024):
    """Largest row tile whose (tile, cols) block stays under target_bytes.

    Keeps the tile a multiple of 8 (sublane granularity) and, when possible,
    an even divisor of `rows` so every grid step is a full block.
    """
    bytes_per_row = max(1, cols * itemsize)
    max_rows = max(1, target_bytes // bytes_per_row)
    if rows <= max_rows:
        return rows  # full extent: always a legal block shape
    tile = max(8, (max_rows // 8) * 8)
    # Prefer a tile that divides rows evenly (no ragged final block).
    t = tile
    while t > 8 and rows % t != 0:
        t -= 8
    if rows % t == 0:
        return t
    return tile  # ragged final block: Pallas masks the out-of-bounds writes


def identity_neural_network(x, w1, w2, w3):
    """Forward of IdentityNeuralNetwork.

    x: (N, C, H, W); w1/w2/w3: (C, 1, 1, 1) depthwise 1x1 conv weights.
    """
    n, c, h, w = x.shape
    rows, cols = n * c, h * w

    # Fold the three per-channel scales into one (tiny (C,) op, in f32 for
    # accuracy), then broadcast across the batch to a per-row scale vector.
    w_folded = (w1.reshape(c).astype(jnp.float32)
                * w2.reshape(c).astype(jnp.float32)
                * w3.reshape(c).astype(jnp.float32))
    w_rows = jnp.broadcast_to(w_folded[None, :], (n, c)).reshape(rows, 1)

    # Lane-dense 2D view of the contiguous NCHW array (free layout plumbing).
    x2d = x.reshape(rows, cols)

    tile_rows = _pick_tile_rows(rows, cols, x.dtype.itemsize)
    grid = (pl.cdiv(rows, tile_rows),)

    out2d = pl.pallas_call(
        _scale_rows_kernel,
        out_shape=jax.ShapeDtypeStruct((rows, cols), x.dtype),
        grid_spec=pltpu.PrefetchScalarGridSpec(
            num_scalar_prefetch=0,
            grid=grid,
            in_specs=[
                pl.BlockSpec((tile_rows, cols), lambda i: (i, 0)),
                pl.BlockSpec((tile_rows, 1), lambda i: (i, 0)),
            ],
            out_specs=pl.BlockSpec((tile_rows, cols), lambda i: (i, 0)),
        ),
        compiler_params=pltpu.CompilerParams(
            dimension_semantics=("parallel",),
            # Explicit scoped-VMEM cap; with <=2 MiB blocks the double-buffered
            # in+out traffic (~4x block) fits comfortably on v5e/v6e/v7x.
            vmem_limit_bytes=32 * 1024 * 1024,
        ),
    )(x2d, w_rows)

    return out2d.reshape(n, c, h, w)


if __name__ == "__main__":
    # Small shapes consistent with the module: batch=2, channels=4, spatial=16
    N, C, H, W = 2, 4, 16, 16

    key = jax.random.PRNGKey(0)
    x = jax.random.normal(key, (N, C, H, W), dtype=jnp.float32)

    # Deterministic parameter init, exactly as the module's __init__:
    # every conv weight is torch.ones(channels, 1, 1, 1), bias=False.
    w_conv1 = jnp.ones((C, 1, 1, 1), dtype=jnp.float32)
    w_conv2 = jnp.ones((C, 1, 1, 1), dtype=jnp.float32)
    w_conv3 = jnp.ones((C, 1, 1, 1), dtype=jnp.float32)

    out = identity_neural_network(x, w_conv1, w_conv2, w_conv3)
    out = jax.block_until_ready(out)

    # Reference: three depthwise 1x1 convs == per-channel scale chain.
    ref = (x
           * w_conv1.reshape(1, C, 1, 1)
           * w_conv2.reshape(1, C, 1, 1)
           * w_conv3.reshape(1, C, 1, 1))
    assert out.shape == x.shape and out.dtype == x.dtype
    assert jnp.allclose(out, ref, atol=1e-6), "mismatch vs reference"

    print("KERNEL_OK")
</pallas_src>

<mosaic_0001>
module attributes {stable_mosaic.version = 11 : i64} {
  func.func @_scale_rows_kernel(%arg0: i32, %arg1: memref<8x256xf32, #tpu.memory_space<vmem>>, %arg2: memref<8x1xf32, #tpu.memory_space<vmem>>, %arg3: memref<8x256xf32, #tpu.memory_space<vmem>>) attributes {dimension_semantics = [#tpu.dimension_semantics<parallel>], iteration_bounds = array<i64: 1>, scalar_prefetch = 0 : i64, scratch_operands = 0 : i64, tpu.core_type = #tpu.core_type<tc>, window_params = [{transform_indices = @transform_0, window_bounds = array<i64: 8, 256>}, {transform_indices = @transform_1, window_bounds = array<i64: 8, 1>}, {transform_indices = @transform_2, window_bounds = array<i64: 8, 256>}]} {
    %c0 = arith.constant 0 : index
    %c0_0 = arith.constant 0 : index
    %0 = vector.load %arg1[%c0, %c0_0] : memref<8x256xf32, #tpu.memory_space<vmem>>, vector<8x256xf32>
    %c0_1 = arith.constant 0 : index
    %c0_2 = arith.constant 0 : index
    %1 = vector.load %arg2[%c0_1, %c0_2] : memref<8x1xf32, #tpu.memory_space<vmem>>, vector<8x1xf32>
    %2 = vector.broadcast %1 : vector<8x1xf32> to vector<8x256xf32>
    %3 = arith.mulf %0, %2 : vector<8x256xf32>
    %c0_3 = arith.constant 0 : index
    %c0_4 = arith.constant 0 : index
    %4 = vector.load %arg3[%c0_3, %c0_4] : memref<8x256xf32, #tpu.memory_space<vmem>>, vector<8x256xf32>
    tpu.vector_store %arg3[%c0_3, %c0_4], %3 {strides = array<i32>} : memref<8x256xf32, #tpu.memory_space<vmem>>, vector<8x256xf32>,
    return
  }
  func.func @transform_0(%arg0: i32) -> (i32, i32) {
    %c0_i32 = arith.constant 0 : i32
    %c0_i32_0 = arith.constant 0 : i32
    return %arg0, %c0_i32 : i32, i32
  }
  func.func @transform_1(%arg0: i32) -> (i32, i32) {
    %c0_i32 = arith.constant 0 : i32
    %c0_i32_0 = arith.constant 0 : i32
    return %arg0, %c0_i32 : i32, i32
  }
  func.func @transform_2(%arg0: i32) -> (i32, i32) {
    %c0_i32 = arith.constant 0 : i32
    %c0_i32_0 = arith.constant 0 : i32
    return %arg0, %c0_i32 : i32, i32
  }
}

</mosaic_0001>

<bundles_post_ra>
// kernel: tpu_custom_call.1
= control target key start
LH: loop header
LB: loop body
LE: loop exit
PB: predicated region body
PF: predicated region fallthrough
CT: control target
= control target key end

     0   :  { %7 = vsyncpa [#allocation3], 0  ;;  %s138_s0 = inlined_call_operand.hbm [shape: f32[8,256], index: 0, kind: input, shape index: {}]   ;;  %s139_s1 = inlined_call_operand.vmem [shape: f32[8,1], index: 1, kind: input, shape index: {}]   ;;  %s140_s2 = inlined_call_operand.hbm [shape: f32[8,256], index: 2, kind: output, shape index: {}]  }
   0x1   :  { %8 = vsyncpa [#allocation4], 0  ;;  %s14_s11 = sshll.u32 %s138_s0, 4  ;;  %s111_s12 = smov [#allocation2]   ;;  %s15_s11 = int_to_ptr.hbm [resolvable:$true] %s14_s11 }
   0x2   :  { %s16_s13 = sshll.u32 %s111_s12, 4  ;;  %s17_s13 = int_to_ptr.vmem [resolvable:$true] %s16_s13 }
   0x3   :  { %19 = dma.hbm_to_vmem [thread:$0]  %s15_s11, 256, %s17_s13, [#allocation3]  }
   0x4   :  { %107 = dma.done.wait [#allocation3], 256  }
   0x5   :  { %108 = vsyncadd [#allocation3], 4294967040  ;;  %v112_v0 = vmov 0   ;;  %v28_v1 = vld [vmem:[%s139_s1] sm:$0xff]  ;;  %v27_v3 = vld [vmem:[#allocation2 + $0x8] sm:$0xff]  ;;  %s113_s16 = smov [#allocation5]  }
   0x6   :  { %58 = vset.pattern.permute.xlu0 %v112_v0  ;;  %v26_v2 = vld [vmem:[#allocation2] sm:$0xff]  ;;  %s43_s17 = sshll.u32 %s113_s16, 4  ;;  %s45_s19 = sshll.u32 %s140_s2, 4  ;;  %s44_s17 = int_to_ptr.vmem [resolvable:$true] %s43_s17  ;;  %s46_s19 = int_to_ptr.hbm [resolvable:$true] %s45_s19 }
   0x7   :  { %31 = vperm.xlu0 %58, %v28_v1  }
  0x79   :  { %v32_v4 = vpop.permute.xlu0 %31 }
  0x7a   :  { %v34_v5 = vmul.f32 %v32_v4, %v26_v2  ;;  %v35_v6 = vmul.f32 %v32_v4, %v27_v3 }
  0x7c   :  { %36 = vst [vmem:[#allocation5] sm:$0xff] %v34_v5 }
  0x7d   :  { %37 = vst [vmem:[#allocation5 + $0x8] sm:$0xff] %v35_v6 }
  0x7e   :  { %48 = dma.vmem_to_hbm [thread:$0]  %s44_s17, 256, %s46_s19, [#allocation4]  }
  0x7f   :  { %109 = dma.done.wait [#allocation4], 256  }
  0x80   :  { %110 = vsyncadd [#allocation4], 4294967040 }
  0x81   :  { %53 = vsyncpa [#allocation3], 1 }
  0x82   :  { %54 = vsyncpa [#allocation4], 1 }

</bundles_post_ra>
